<compile_context>
chip_gen: v7x
topology: tpu7x:2x2x1
jax: 0.10.0
libtpu: 0.0.40
codegen_flags: <defaults>
</compile_context>

<pallas_src>
import functools

import jax
import jax.numpy as jnp
from jax.experimental import pallas as pl
from jax.experimental.pallas import tpu as pltpu

_ROW_ALIGN = 16          # row-block granularity (bf16-friendly sublane tile)
_ROW_TILE_MAX = 512      # ~85% of HBM roofline already at 512 rows
_C_TILE_MAX = 2048       # class-dim tile (multiple of 128)
_EPS = 1e-8


# ---------------------------------------------------------------------------
# helpers
# ---------------------------------------------------------------------------
def _round_up(x, m):
    return ((x + m - 1) // m) * m


def _vmem_capacity_bytes():
    try:
        return int(pltpu.get_tpu_info().vmem_capacity_bytes)
    except Exception:
        return 64 * 1024 * 1024   # conservative (v7x per-core VMEM)


def _pick_tiles(L, C, in_itemsize, vmem_limit):
    """Pick (row_tile, c_tile) from the VMEM budget.

    Per-row VMEM cost ~ double-buffered input block + ~4 live f32 (rt, ct)
    temporaries + ~2.5 KiB of 128x lane-padded (rt, 1) gold/mask/scratch rows.
    """
    c_tile = C if C <= _C_TILE_MAX else _C_TILE_MAX
    per_row = 2 * c_tile * in_itemsize + 4 * c_tile * 4 + 2560
    rt = int(vmem_limit // per_row)
    rt = max(_ROW_ALIGN, min(rt, _ROW_TILE_MAX))
    rt = (rt // _ROW_ALIGN) * _ROW_ALIGN
    rt = min(rt, _round_up(L, _ROW_ALIGN))
    return max(rt, _ROW_ALIGN), c_tile


# ---------------------------------------------------------------------------
# kernel
# ---------------------------------------------------------------------------
def _seq2seq_kernel(low, conf, L, C, row_tile, c_tile, n_c, reduce_mode,
                    x_ref, gold_ref, mask_ref, w_ref, out_ref, *scratch):
    """One (row block i, class block j) step.

    Accumulated per-row statistics over class blocks:
      (m, s)    online logsumexp of the raw logits           -> LSE
      wg        w[gold]                                      (gold term)
      wxg       w[gold] * x[gold]                            (gold term)
      wx        sum_c w_c * x_c          (only if smoothing > 0)
      ws        sum_c w_c                (only if smoothing > 0, row-const)
    Final per-row loss:
      (low*ws + (conf-low)*wg) * LSE - low*wx - (conf-low)*wxg
    """
    i = pl.program_id(0)
    j = pl.program_id(1)

    x = x_ref[...].astype(jnp.float32)            # (RT, CT) f32
    gold = gold_ref[...]                          # (RT, 1)  int32
    w_row = w_ref[...]                            # (1, CT)  f32

    col = j * c_tile + jax.lax.broadcasted_iota(jnp.int32, x.shape, 1)
    ragged_c = (n_c > 1) and (C % c_tile != 0)
    if ragged_c:
        # Last class block reads past C: mask the garbage lanes explicitly.
        col_ok = col < C
        col_w = j * c_tile + jax.lax.broadcasted_iota(jnp.int32, (1, c_tile), 1)
        x_lse = jnp.where(col_ok, x, -jnp.inf)
        w_use = jnp.where(col_w < C, w_row, 0.0)
    else:
        x_lse = x
        w_use = w_row

    sel = col == gold                                                 # (RT,CT)
    blk_max = jnp.max(x_lse, axis=-1, keepdims=True)                  # (RT,1)
    wg_blk = jnp.sum(jnp.where(sel, w_use, 0.0), axis=-1, keepdims=True)
    wxg_blk = jnp.sum(jnp.where(sel, w_use * x, 0.0), axis=-1, keepdims=True)
    if low != 0.0:
        wx = w_use * x
        if ragged_c:
            wx = jnp.where(col_ok, wx, 0.0)
        wx_blk = jnp.sum(wx, axis=-1, keepdims=True)                  # (RT,1)
        ws_blk = jnp.sum(w_use, axis=-1, keepdims=True)               # (1,1)

    def _finalize(lse, wg, wxg, wx_sum, ws):
        coef = (conf - low) * wg                                      # (RT,1)
        if low != 0.0:
            coef = coef + low * ws                                    # bcast
        per_row = coef * lse - (conf - low) * wxg
        if low != 0.0:
            per_row = per_row - low * wx_sum
        # Zero out-of-range rows of the ragged last block with a select on the
        # row index (garbage logits/mask may be NaN; where() discards them).
        row = i * row_tile + jax.lax.broadcasted_iota(
            jnp.int32, (row_tile, 1), 0)
        per_row = jnp.where(row < L, per_row * mask_ref[...], 0.0)
        if reduce_mode:
            out_ref[...] = jnp.zeros_like(out_ref) + jnp.sum(per_row)
        else:
            out_ref[...] = per_row

    if n_c == 1:
        # Single class block: no scratch, compute LSE directly.
        s_blk = jnp.sum(jnp.exp(x_lse - blk_max), axis=-1, keepdims=True)
        lse = blk_max + jnp.log(s_blk)
        _finalize(lse, wg_blk, wxg_blk,
                  wx_blk if low != 0.0 else None,
                  ws_blk if low != 0.0 else None)
        return

    # n_c > 1: online accumulation across class blocks.
    if low != 0.0:
        m_sc, s_sc, wg_sc, wxg_sc, wx_sc, ws_sc = scratch
    else:
        m_sc, s_sc, wg_sc, wxg_sc = scratch
        wx_sc = ws_sc = None

    @pl.when(j == 0)
    def _():
        m_sc[...] = jnp.full_like(m_sc, -jnp.inf)
        s_sc[...] = jnp.zeros_like(s_sc)
        wg_sc[...] = jnp.zeros_like(wg_sc)
        wxg_sc[...] = jnp.zeros_like(wxg_sc)
        if wx_sc is not None:
            wx_sc[...] = jnp.zeros_like(wx_sc)
            ws_sc[...] = jnp.zeros_like(ws_sc)

    m_old = m_sc[...]
    m_new = jnp.maximum(m_old, blk_max)
    s_sc[...] = (s_sc[...] * jnp.exp(m_old - m_new)
                 + jnp.sum(jnp.exp(x_lse - m_new), axis=-1, keepdims=True))
    m_sc[...] = m_new
    wg_sc[...] = wg_sc[...] + wg_blk
    wxg_sc[...] = wxg_sc[...] + wxg_blk
    if wx_sc is not None:
        wx_sc[...] = wx_sc[...] + wx_blk
        ws_sc[...] = ws_sc[...] + ws_blk

    @pl.when(j == n_c - 1)
    def _():
        lse = m_sc[...] + jnp.log(s_sc[...])
        _finalize(lse, wg_sc[...], wxg_sc[...],
                  wx_sc[...] if wx_sc is not None else None,
                  ws_sc[...] if ws_sc is not None else None)


# ---------------------------------------------------------------------------
# wrapper
# ---------------------------------------------------------------------------
def seq2seq_loss(outputs, gold_label_ids, mask, weight=None, *,
                 smoothing=0.1, reduce=True, row_tile=None, c_tile=None):
    """Pallas TPU forward pass of the PyTorch Seq2SeqLoss module.

    outputs: (B, S, C) float (f32 or bf16); gold_label_ids: (B, S) int;
    mask: (B, S) bool; weight: optional (C,) per-class weights.
    """
    assert 0 <= smoothing < 1
    B, S, C = outputs.shape
    L = B * S
    if weight is None:
        weight = jnp.ones((C,), jnp.float32)

    confidence = 1.0 - float(smoothing)
    low = float(smoothing) / (C - 1) if C > 1 else 0.0

    x = outputs.reshape(L, C)                        # caller dtype stays in HBM
    gold = gold_label_ids.reshape(L, 1).astype(jnp.int32)
    msk = mask.reshape(L, 1).astype(jnp.float32)
    w = weight.reshape(1, C).astype(jnp.float32)

    in_itemsize = jnp.dtype(x.dtype).itemsize
    vmem_limit = min(int(_vmem_capacity_bytes() * 0.8), 100 * 1024 * 1024)

    auto_rt, auto_ct = _pick_tiles(L, C, in_itemsize, vmem_limit)
    if c_tile is None:
        c_tile = auto_ct
    else:
        c_tile = C if int(c_tile) >= C else max(128, (int(c_tile) // 128) * 128)
    if row_tile is None:
        row_tile = auto_rt
    else:
        row_tile = max(_ROW_ALIGN, (int(row_tile) // _ROW_ALIGN) * _ROW_ALIGN)

    n_row = pl.cdiv(L, row_tile)
    n_c = pl.cdiv(C, c_tile)
    assert n_row >= 1 and n_c >= 1

    kernel = functools.partial(_seq2seq_kernel, low, confidence, L, C,
                               row_tile, c_tile, n_c, bool(reduce))

    in_specs = [
        pl.BlockSpec((row_tile, c_tile), lambda i, j: (i, j)),   # logits
        pl.BlockSpec((row_tile, 1), lambda i, j: (i, 0)),        # gold ids
        pl.BlockSpec((row_tile, 1), lambda i, j: (i, 0)),        # mask
        pl.BlockSpec((1, c_tile), lambda i, j: (0, j)),          # class weights
    ]

    if n_c > 1:
        scratch_shapes = [pltpu.VMEM((row_tile, 1), jnp.float32)] * 4
        if low != 0.0:
            scratch_shapes = scratch_shapes + [
                pltpu.VMEM((row_tile, 1), jnp.float32),   # sum_c w*x
                pltpu.VMEM((1, 1), jnp.float32),          # sum_c w
            ]
    else:
        scratch_shapes = []

    cost = pl.CostEstimate(
        flops=int(8 * L * C),
        transcendentals=int(L * C),
        bytes_accessed=int(L * C * in_itemsize + 8 * L + 4 * C))

    cparams = pltpu.CompilerParams(
        dimension_semantics=("parallel", "arbitrary"),
        vmem_limit_bytes=vmem_limit)

    if reduce:
        partials = pl.pallas_call(
            kernel,
            out_shape=jax.ShapeDtypeStruct((n_row, 1, 1), jnp.float32),
            grid_spec=pltpu.PrefetchScalarGridSpec(
                num_scalar_prefetch=0,
                grid=(n_row, n_c),
                in_specs=in_specs,
                out_specs=pl.BlockSpec((1, 1, 1), lambda i, j: (i, 0, 0)),
                scratch_shapes=scratch_shapes),
            compiler_params=cparams,
            cost_estimate=cost,
        )(x, gold, msk, w)
        return jnp.sum(partials) / (jnp.sum(msk) + _EPS)

    per_tok = pl.pallas_call(
        kernel,
        out_shape=jax.ShapeDtypeStruct((L, 1), jnp.float32),
        grid_spec=pltpu.PrefetchScalarGridSpec(
            num_scalar_prefetch=0,
            grid=(n_row, n_c),
            in_specs=in_specs,
            out_specs=pl.BlockSpec((row_tile, 1), lambda i, j: (i, 0)),
            scratch_shapes=scratch_shapes),
        compiler_params=cparams,
        cost_estimate=cost,
    )(x, gold, msk, w)
    return per_tok[:, 0]


# ---------------------------------------------------------------------------
# pure-JAX reference of the PyTorch semantics
# ---------------------------------------------------------------------------
def _reference_loss(outputs, gold_label_ids, mask, weight, smoothing,
                    reduce=True):
    B, S, C = outputs.shape
    L = B * S
    x = outputs.reshape(L, C).astype(jnp.float32)
    neg_log_sm = -jax.nn.log_softmax(x, axis=-1)
    confidence = 1.0 - smoothing
    low = smoothing / (C - 1)
    onehot = jax.nn.one_hot(gold_label_ids.reshape(-1), C, dtype=jnp.float32)
    smooth = low + (confidence - low) * onehot
    loss = jnp.sum(weight.astype(jnp.float32) * neg_log_sm * smooth, axis=-1)
    m = mask.reshape(-1).astype(jnp.float32)
    loss = loss * m
    if reduce:
        return jnp.sum(loss) / (jnp.sum(m) + _EPS)
    return loss


if __name__ == "__main__":
    keys = jax.random.split(jax.random.PRNGKey(0), 12)
    smoothing = 0.1

    # --- small config: single tile, both reduce paths, smoothing==0 path ----
    B, S, C = 2, 8, 32
    outputs = jax.random.normal(keys[0], (B, S, C), dtype=jnp.float32)
    gold = jax.random.randint(keys[1], (B, S), 0, C, dtype=jnp.int32)
    mask = jax.random.bernoulli(keys[2], 0.8, (B, S))
    weight = jax.random.uniform(keys[3], (C,), dtype=jnp.float32,
                                minval=0.5, maxval=1.5)

    loss = jax.block_until_ready(
        seq2seq_loss(outputs, gold, mask, weight, smoothing=smoothing, reduce=True))
    per_tok = jax.block_until_ready(
        seq2seq_loss(outputs, gold, mask, weight, smoothing=smoothing, reduce=False))
    ref = _reference_loss(outputs, gold, mask, weight, smoothing, True)
    ref_tok = _reference_loss(outputs, gold, mask, weight, smoothing, False)
    assert jnp.allclose(loss, ref, rtol=1e-5, atol=1e-5), (loss, ref)
    assert jnp.allclose(per_tok, ref_tok, rtol=1e-5, atol=1e-5)

    loss0 = jax.block_until_ready(
        seq2seq_loss(outputs, gold, mask, weight, smoothing=0.0, reduce=True))
    ref0 = _reference_loss(outputs, gold, mask, weight, 0.0, True)
    assert jnp.allclose(loss0, ref0, rtol=1e-5, atol=1e-5), (loss0, ref0)

    # --- multi-row-block config: ragged last row block (no logit padding),
    #     pipelined grid, plus bf16 logit streaming with auto tile sizes.
    B2, S2, C2 = 4, 37, 128
    out2 = jax.random.normal(keys[4], (B2, S2, C2), dtype=jnp.float32)
    gold2 = jax.random.randint(keys[5], (B2, S2), 0, C2, dtype=jnp.int32)
    mask2 = jax.random.bernoulli(keys[6], 0.7, (B2, S2))
    w2 = jax.random.uniform(keys[7], (C2,), dtype=jnp.float32,
                            minval=0.5, maxval=1.5)

    loss2 = jax.block_until_ready(
        seq2seq_loss(out2, gold2, mask2, w2, smoothing=smoothing,
                     reduce=True, row_tile=16))
    tok2 = jax.block_until_ready(
        seq2seq_loss(out2, gold2, mask2, w2, smoothing=smoothing,
                     reduce=False, row_tile=16))
    ref2 = _reference_loss(out2, gold2, mask2, w2, smoothing, True)
    ref_tok2 = _reference_loss(out2, gold2, mask2, w2, smoothing, False)
    assert jnp.allclose(loss2, ref2, rtol=1e-4, atol=1e-4), (loss2, ref2)
    assert jnp.allclose(tok2, ref_tok2, rtol=1e-4, atol=1e-4)

    out2_bf16 = out2.astype(jnp.bfloat16)
    loss_bf = jax.block_until_ready(
        seq2seq_loss(out2_bf16, gold2, mask2, w2, smoothing=smoothing, reduce=True))
    ref_bf = _reference_loss(out2_bf16, gold2, mask2, w2, smoothing, True)
    assert jnp.allclose(loss_bf, ref_bf, rtol=1e-4, atol=1e-4), (loss_bf, ref_bf)

    # --- class-tiled config: online logsumexp over 2 class blocks with a
    #     ragged last class block AND a ragged last row block; smoothing==0
    #     additionally exercises the 4-scratch variant.
    B3, S3, C3 = 2, 25, 384
    out3 = jax.random.normal(keys[8], (B3, S3, C3), dtype=jnp.float32)
    gold3 = jax.random.randint(keys[9], (B3, S3), 0, C3, dtype=jnp.int32)
    mask3 = jax.random.bernoulli(keys[10], 0.75, (B3, S3))
    w3 = jax.random.uniform(keys[11], (C3,), dtype=jnp.float32,
                            minval=0.5, maxval=1.5)

    loss3 = jax.block_until_ready(
        seq2seq_loss(out3, gold3, mask3, w3, smoothing=smoothing,
                     reduce=True, row_tile=16, c_tile=256))
    tok3 = jax.block_until_ready(
        seq2seq_loss(out3, gold3, mask3, w3, smoothing=smoothing,
                     reduce=False, row_tile=16, c_tile=256))
    loss3_0 = jax.block_until_ready(
        seq2seq_loss(out3, gold3, mask3, w3, smoothing=0.0,
                     reduce=True, row_tile=16, c_tile=256))
    ref3 = _reference_loss(out3, gold3, mask3, w3, smoothing, True)
    ref_tok3 = _reference_loss(out3, gold3, mask3, w3, smoothing, False)
    ref3_0 = _reference_loss(out3, gold3, mask3, w3, 0.0, True)
    assert jnp.allclose(loss3, ref3, rtol=1e-4, atol=1e-4), (loss3, ref3)
    assert jnp.allclose(tok3, ref_tok3, rtol=1e-4, atol=1e-4)
    assert jnp.allclose(loss3_0, ref3_0, rtol=1e-4, atol=1e-4), (loss3_0, ref3_0)

    print("KERNEL_OK")
</pallas_src>

<mosaic_0001>
module attributes {stable_mosaic.version = 11 : i64} {
  func.func @_seq2seq_kernel(%arg0: i32, %arg1: i32, %arg2: memref<16x32xf32, #tpu.memory_space<vmem>>, %arg3: memref<16x1xi32, #tpu.memory_space<vmem>>, %arg4: memref<16x1xf32, #tpu.memory_space<vmem>>, %arg5: memref<1x32xf32, #tpu.memory_space<vmem>>, %arg6: memref<1x1x1xf32, #tpu.memory_space<vmem>>) attributes {dimension_semantics = [#tpu.dimension_semantics<parallel>, #tpu.dimension_semantics<arbitrary>], iteration_bounds = array<i64: 1, 1>, scalar_prefetch = 0 : i64, scratch_operands = 0 : i64, tpu.core_type = #tpu.core_type<tc>, window_params = [{transform_indices = @transform_0, window_bounds = array<i64: 16, 32>}, {transform_indices = @transform_1, window_bounds = array<i64: 16, 1>}, {transform_indices = @transform_2, window_bounds = array<i64: 16, 1>}, {transform_indices = @transform_3, window_bounds = array<i64: 1, 32>}, {transform_indices = @transform_4, window_bounds = array<i64: 1, 1, 1>}]} {
    %c0 = arith.constant 0 : index
    %c0_0 = arith.constant 0 : index
    %0 = vector.load %arg2[%c0, %c0_0] : memref<16x32xf32, #tpu.memory_space<vmem>>, vector<16x32xf32>
    %c0_1 = arith.constant 0 : index
    %c0_2 = arith.constant 0 : index
    %1 = vector.load %arg3[%c0_1, %c0_2] : memref<16x1xi32, #tpu.memory_space<vmem>>, vector<16x1xi32>
    %c0_3 = arith.constant 0 : index
    %c0_4 = arith.constant 0 : index
    %2 = vector.load %arg5[%c0_3, %c0_4] : memref<1x32xf32, #tpu.memory_space<vmem>>, vector<1x32xf32>
    %c32_i32 = arith.constant 32 : i32
    %3 = arith.muli %arg1, %c32_i32 : i32
    %4 = tpu.iota {dimensions = array<i32: 1>} : vector<16x32xi32>
    %5 = vector.broadcast %3 : i32 to vector<16x32xi32>
    %6 = arith.addi %5, %4 : vector<16x32xi32>
    %7 = vector.broadcast %1 : vector<16x1xi32> to vector<16x32xi32>
    %8 = arith.cmpi eq, %6, %7 : vector<16x32xi32>
    %cst = arith.constant dense<0xFF800000> : vector<16xf32>
    %9 = vector.multi_reduction <maximumf>, %0, %cst [1] : vector<16x32xf32> to vector<16xf32>
    %10 = vector.shape_cast %9 : vector<16xf32> to vector<16x1xf32>
    %cst_5 = arith.constant 0.000000e+00 : f32
    %11 = vector.shape_cast %2 : vector<1x32xf32> to vector<1x32xf32>
    %12 = vector.broadcast %11 : vector<1x32xf32> to vector<16x32xf32>
    %13 = vector.broadcast %cst_5 : f32 to vector<16x32xf32>
    %14 = arith.select %8, %12, %13 : vector<16x32xi1>, vector<16x32xf32>
    %cst_6 = arith.constant dense<0.000000e+00> : vector<16xf32>
    %15 = vector.multi_reduction <add>, %14, %cst_6 [1] : vector<16x32xf32> to vector<16xf32>
    %16 = vector.shape_cast %15 : vector<16xf32> to vector<16x1xf32>
    %17 = vector.broadcast %2 : vector<1x32xf32> to vector<16x32xf32>
    %18 = arith.mulf %17, %0 : vector<16x32xf32>
    %cst_7 = arith.constant 0.000000e+00 : f32
    %19 = vector.broadcast %cst_7 : f32 to vector<16x32xf32>
    %20 = arith.select %8, %18, %19 : vector<16x32xi1>, vector<16x32xf32>
    %cst_8 = arith.constant dense<0.000000e+00> : vector<16xf32>
    %21 = vector.multi_reduction <add>, %20, %cst_8 [1] : vector<16x32xf32> to vector<16xf32>
    %22 = vector.shape_cast %21 : vector<16xf32> to vector<16x1xf32>
    %23 = vector.broadcast %2 : vector<1x32xf32> to vector<16x32xf32>
    %24 = arith.mulf %23, %0 : vector<16x32xf32>
    %cst_9 = arith.constant dense<0.000000e+00> : vector<16xf32>
    %25 = vector.multi_reduction <add>, %24, %cst_9 [1] : vector<16x32xf32> to vector<16xf32>
    %26 = vector.shape_cast %25 : vector<16xf32> to vector<16x1xf32>
    %cst_10 = arith.constant dense<0.000000e+00> : vector<1xf32>
    %27 = vector.multi_reduction <add>, %2, %cst_10 [1] : vector<1x32xf32> to vector<1xf32>
    %28 = vector.shape_cast %27 : vector<1xf32> to vector<1x1xf32>
    %29 = vector.broadcast %10 : vector<16x1xf32> to vector<16x32xf32>
    %30 = arith.subf %0, %29 : vector<16x32xf32>
    %31 = math.exp %30 : vector<16x32xf32>
    %cst_11 = arith.constant dense<0.000000e+00> : vector<16xf32>
    %32 = vector.multi_reduction <add>, %31, %cst_11 [1] : vector<16x32xf32> to vector<16xf32>
    %33 = vector.shape_cast %32 : vector<16xf32> to vector<16x1xf32>
    %34 = math.log %33 : vector<16x1xf32>
    %35 = arith.addf %10, %34 : vector<16x1xf32>
    %cst_12 = arith.constant 0.896774172 : f32
    %36 = vector.broadcast %cst_12 : f32 to vector<16x1xf32>
    %37 = arith.mulf %36, %16 : vector<16x1xf32>
    %cst_13 = arith.constant 0.0032258064 : f32
    %38 = vector.broadcast %cst_13 : f32 to vector<1x1xf32>
    %39 = arith.mulf %38, %28 : vector<1x1xf32>
    %40 = vector.broadcast %39 : vector<1x1xf32> to vector<16x1xf32>
    %41 = arith.addf %37, %40 : vector<16x1xf32>
    %42 = arith.mulf %41, %35 : vector<16x1xf32>
    %cst_14 = arith.constant 0.896774172 : f32
    %43 = vector.broadcast %cst_14 : f32 to vector<16x1xf32>
    %44 = arith.mulf %43, %22 : vector<16x1xf32>
    %45 = arith.subf %42, %44 : vector<16x1xf32>
    %cst_15 = arith.constant 0.0032258064 : f32
    %46 = vector.broadcast %cst_15 : f32 to vector<16x1xf32>
    %47 = arith.mulf %46, %26 : vector<16x1xf32>
    %48 = arith.subf %45, %47 : vector<16x1xf32>
    %c16_i32 = arith.constant 16 : i32
    %49 = arith.muli %arg0, %c16_i32 : i32
    %50 = tpu.iota {dimensions = array<i32: 0>} : vector<16x1xi32>
    %51 = vector.broadcast %49 : i32 to vector<16x1xi32>
    %52 = arith.addi %51, %50 : vector<16x1xi32>
    %c16_i32_16 = arith.constant 16 : i32
    %53 = vector.broadcast %c16_i32_16 : i32 to vector<16x1xi32>
    %54 = arith.cmpi slt, %52, %53 : vector<16x1xi32>
    %c0_17 = arith.constant 0 : index
    %c0_18 = arith.constant 0 : index
    %55 = vector.load %arg4[%c0_17, %c0_18] : memref<16x1xf32, #tpu.memory_space<vmem>>, vector<16x1xf32>
    %56 = arith.mulf %48, %55 : vector<16x1xf32>
    %cst_19 = arith.constant 0.000000e+00 : f32
    %57 = vector.broadcast %cst_19 : f32 to vector<16x1xf32>
    %58 = arith.select %54, %56, %57 : vector<16x1xi1>, vector<16x1xf32>
    %cst_20 = arith.constant 0.000000e+00 : f32
    %59 = vector.broadcast %cst_20 : f32 to vector<1x1x1xf32>
    %60 = vector.shape_cast %58 : vector<16x1xf32> to vector<1x16x1xf32>
    %cst_21 = arith.constant dense<0.000000e+00> : vector<1xf32>
    %61 = vector.multi_reduction <add>, %60, %cst_21 [1, 2] : vector<1x16x1xf32> to vector<1xf32>
    %62 = vector.shape_cast %61 : vector<1xf32> to vector<1x1x1xf32>
    %63 = vector.extract %62[0, 0, 0] : f32 from vector<1x1x1xf32>
    %64 = vector.broadcast %63 : f32 to vector<1x1x1xf32>
    %65 = arith.addf %59, %64 : vector<1x1x1xf32>
    %c0_22 = arith.constant 0 : index
    %c0_23 = arith.constant 0 : index
    %c0_24 = arith.constant 0 : index
    %66 = vector.load %arg6[%c0_22, %c0_23, %c0_24] : memref<1x1x1xf32, #tpu.memory_space<vmem>>, vector<1x1x1xf32>
    tpu.vector_store %arg6[%c0_22, %c0_23, %c0_24], %65 {strides = array<i32>} : memref<1x1x1xf32, #tpu.memory_space<vmem>>, vector<1x1x1xf32>,
    return
  }
  func.func @transform_0(%arg0: i32, %arg1: i32) -> (i32, i32) {
    %c0_i32 = arith.constant 0 : i32
    return %arg0, %arg1 : i32, i32
  }
  func.func @transform_1(%arg0: i32, %arg1: i32) -> (i32, i32) {
    %c0_i32 = arith.constant 0 : i32
    %c0_i32_0 = arith.constant 0 : i32
    return %arg0, %c0_i32 : i32, i32
  }
  func.func @transform_2(%arg0: i32, %arg1: i32) -> (i32, i32) {
    %c0_i32 = arith.constant 0 : i32
    %c0_i32_0 = arith.constant 0 : i32
    return %arg0, %c0_i32 : i32, i32
  }
  func.func @transform_3(%arg0: i32, %arg1: i32) -> (i32, i32) {
    %c0_i32 = arith.constant 0 : i32
    %c0_i32_0 = arith.constant 0 : i32
    return %c0_i32, %arg1 : i32, i32
  }
  func.func @transform_4(%arg0: i32, %arg1: i32) -> (i32, i32, i32) {
    %c0_i32 = arith.constant 0 : i32
    %c0_i32_0 = arith.constant 0 : i32
    %c0_i32_1 = arith.constant 0 : i32
    return %arg0, %c0_i32, %c0_i32_0 : i32, i32, i32
  }
}

</mosaic_0001>

<bundles_post_ra>
// kernel: tpu_custom_call.1
= control target key start
LH: loop header
LB: loop body
LE: loop exit
PB: predicated region body
PF: predicated region fallthrough
CT: control target
= control target key end

     0   :  { %vm36_vm0 = vcmask 261120   ;;  %v198_v4 = vmov 0   ;;  %s270_s0 = inlined_call_operand.vmem [shape: f32[16,32], index: 0, kind: input, shape index: {}]   ;;  %s271_s1 = inlined_call_operand.vmem [shape: s32[16,1], index: 1, kind: input, shape index: {}]   ;;  %s272_s2 = inlined_call_operand.vmem [shape: f32[16,1], index: 2, kind: input, shape index: {}]   ;;  %s273_s3 = inlined_call_operand.vmem [shape: f32[1,32], index: 3, kind: input, shape index: {}]   ;;  %s274_s4 = inlined_call_operand.hbm [shape: f32[1,1,1], index: 4, kind: output, shape index: {}]  }
   0x1   :  { %v18_v0 = vld [vmem:[%s270_s0] sm:$0xff]  ;;  %v19_v1 = vld [vmem:[%s270_s0 + $0x8] sm:$0xff]  ;;  %164 = vset.pattern.permute.xlu1 %v198_v4  ;;  %165 = vset.pattern.permute.xlu0 %v198_v4 }
   0x2   :  { %v20_v2 = vld [vmem:[%s271_s1] sm:$0xff]  ;;  %v37_v3 = vsel %vm36_vm0, %v18_v0, -inf }
   0x3   :  { %9 = vsyncpa [#allocation3], 0  ;;  %38 = vmax.xlane.f32.xlu0 %v37_v3  ;;  %29 = vperm.xlu1 %164, %v20_v2   ;;  %v40_v5 = vsel %vm36_vm0, %v19_v1, -inf  ;;  %v21_v6 = vld [vmem:[%s271_s1 + $0x8] sm:$0xff]  ;;  %v24_v12 = vlaneseq  ;;  %v22_v18 = vld [vmem:[%s273_s3] sm:$0x1] }
   0x4   :  { %vm73_vm1 = vcmask 253952   ;;  %v123_v2 = vld [vmem:[%s272_s2] sm:$0xff]  ;;  %vm129_vm4 = vcmask 7168   ;;  %s199_s26 = smov [#allocation2]   ;;  %vm144_vm5 = vcmask 0  }
   0x5   :  { %v45_v14 = vshrl.u32 %v24_v12, 7  ;;  %v25_v15 = vand.u32 127, %v24_v12  ;;  %v74_v22 = vsel %vm73_vm1, %v22_v18, 0.0  ;;  %s152_s27 = sshll.u32 %s199_s26, 4  ;;  %s153_s27 = int_to_ptr.vmem [resolvable:$true] %s152_s27 }
   0x6   :  { %s174_s28 = scalar_lea.vmem %s153_s27, 16  ;;  %s178_s29 = scalar_lea.vmem %s153_s27, 32 }
   0x7   :  { %41 = vmax.xlane.f32.xlu0 %v40_v5  ;;  %32 = vperm.xlu1 %164, %v21_v6   ;;  %v46_v17 = vsub.s32 0, %v45_v14  ;;  %v124_v5 = vld [vmem:[%s272_s2 + $0x8] sm:$0xff]  ;;  %p175_p0 = scmp.ne.s32.totalorder %s153_s27, %s174_s28  ;;  %p179_p1 = scmp.lt.s32.totalorder %s153_s27, %s153_s27 }
   0x8   :  { %p180_p2 = scmp.lt.s32.totalorder %s178_s29, %s174_s28 }
   0x9   :  { %v47_v21 = vrot.slane %v22_v18, %v46_v17 }
   0xa   :  { %p181_p3 = por %p180_p2, %p179_p1 }
   0xb   :  { %v57_v29 = vmul.f32 %v47_v21, %v18_v0  ;;  %v58_v32 = vmul.f32 %v47_v21, %v19_v1 }
   0xc   :  { %p182_p4 = pnand %p181_p3, %p175_p0 }
   0xd   :  { %v67_v36 = vsel %vm36_vm0, %v57_v29, 0.0  ;;  %v70_v37 = vsel %vm36_vm0, %v58_v32, 0.0 }
  0x82   :  { %v30_v16 = vpop.permute.xlu1 %29 }
  0x83   :  { %vm34_vm2 = vcmp.eq.s32.totalorder %v25_v15, %v30_v16 }
  0x84   :  { %v49_v25 = vsel %vm34_vm2, %v47_v21, 0.0  ;;  %v59_v31 = vsel %vm34_vm2, %v57_v29, 0.0 }
  0x85   :  { %v51_v27 = vsel %vm36_vm0, %v49_v25, 0.0  ;;  %v61_v33 = vsel %vm36_vm0, %v59_v31, 0.0 }
  0x86   :  { %v33_v24 = vpop.permute.xlu1 %32 }
  0x87   :  { %vm35_vm3 = vcmp.eq.s32.totalorder %v25_v15, %v33_v24 }
  0x88   :  { %v50_v28 = vsel %vm35_vm3, %v47_v21, 0.0  ;;  %v60_v34 = vsel %vm35_vm3, %v58_v32, 0.0 }
  0x89   :  { %v54_v30 = vsel %vm36_vm0, %v50_v28, 0.0  ;;  %v64_v35 = vsel %vm36_vm0, %v60_v34, 0.0 }
  0x90   :  { %v39_v7 = vpop.xlane.xlu0 %38 }
  0x91   :  { %v77_v8 = vsub.f32 %v18_v0, %v39_v7 }
  0x93   :  { %v79_v9 = vmul.f32 1.442695, %v77_v8 }
  0x94   :  { %v42_v10 = vpop.xlane.xlu0 %41 }
  0x95   :  { %166 = vpow2.f32 %v79_v9  ;;  %v78_v11 = vsub.f32 %v19_v1, %v42_v10 }
  0x97   :  { %v81_v13 = vmul.f32 1.442695, %v78_v11 }
  0x99   :  { %168 = vpow2.f32 %v81_v13 }
  0x9f   :  { %v167_v19 = vpop.eup %166 }
  0xa0   :  { %v83_v20 = vsel %vm36_vm0, %v167_v19, 0.0 }
  0xa1   :  { %84 = vadd.xlane.f32.xlu0 %v83_v20 }
  0xa3   :  { %v169_v23 = vpop.eup %168 }
  0xa4   :  { %v86_v26 = vsel %vm36_vm0, %v169_v23, 0.0 }
  0xa5   :  { %75 = vadd.xlane.f32.xlu0 %v74_v22  ;;  %87 = vadd.xlane.f32.xlu1 %v86_v26 }
  0xa9   :  { %52 = vadd.xlane.f32.xlu0 %v51_v27 }
  0xad   :  { %55 = vadd.xlane.f32.xlu0 %v54_v30 }
  0xb1   :  { %62 = vadd.xlane.f32.xlu0 %v61_v33 }
  0xb5   :  { %65 = vadd.xlane.f32.xlu0 %v64_v35 }
  0xb9   :  { %68 = vadd.xlane.f32.xlu0 %v67_v36 }
  0xbd   :  { %71 = vadd.xlane.f32.xlu0 %v70_v37 }
 0x12e   :  { %v85_v38 = vpop.xlane.xlu0 %84 }
 0x12f   :  { %170 = vlog2.f32 %v85_v38 }
 0x132   :  { %v88_v39 = vpop.xlane.xlu1 %87  ;;  %v76_v40 = vpop.xlane.xlu0 %75 }
 0x133   :  { %172 = vlog2.f32 %v88_v39  ;;  %v97_v45 = vmul.f32 0.0032258064, %v76_v40 }
 0x135   :  { %v101_v51 = vrot.slane %v97_v45, %v46_v17 }
 0x136   :  { %v53_v41 = vpop.xlane.xlu0 %52 }
 0x137   :  { %v95_v47 = vmul.f32 0.8967742, %v53_v41 }
 0x139   :  { %v171_v42 = vpop.eup %170  ;;  %v102_v52 = vadd.f32 %v101_v51, %v95_v47 }
 0x13a   :  { %v56_v43 = vpop.xlane.xlu0 %55  ;;  %v90_v44 = vmul.f32 0.6931472, %v171_v42 }
 0x13b   :  { %v96_v53 = vmul.f32 0.8967742, %v56_v43 }
 0x13c   :  { %v93_v49 = vadd.f32 %v90_v44, %v39_v7 }
 0x13d   :  { %v173_v46 = vpop.eup %172  ;;  %v103_v58 = vadd.f32 %v101_v51, %v96_v53 }
 0x13e   :  { %v63_v48 = vpop.xlane.xlu0 %62  ;;  %v92_v50 = vmul.f32 0.6931472, %v173_v46  ;;  %v104_v56 = vmul.f32 %v102_v52, %v93_v49 }
 0x13f   :  { %v106_v57 = vmul.f32 0.8967742, %v63_v48 }
 0x140   :  { %v94_v55 = vadd.f32 %v92_v50, %v42_v10 }
 0x141   :  { %v108_v60 = vsub.f32 %v104_v56, %v106_v57 }
 0x142   :  { %v66_v54 = vpop.xlane.xlu0 %65  ;;  %v105_v61 = vmul.f32 %v103_v58, %v94_v55 }
 0x143   :  { %v107_v62 = vmul.f32 0.8967742, %v66_v54 }
 0x145   :  { %v109_v3 = vsub.f32 %v105_v61, %v107_v62 }
 0x146   :  { %v69_v59 = vpop.xlane.xlu0 %68 }
 0x147   :  { %v110_v63 = vmul.f32 0.0032258064, %v69_v59 }
 0x149   :  { %v112_v0 = vsub.f32 %v108_v60, %v110_v63 }
 0x14a   :  { %v72_v1 = vpop.xlane.xlu0 %71 }
 0x14b   :  { %v111_v4 = vmul.f32 0.0032258064, %v72_v1  ;;  %v125_v7 = vmul.f32 %v123_v2, %v112_v0 }
 0x14d   :  { %v113_v6 = vsub.f32 %v109_v3, %v111_v4  ;;  %v130_v9 = vsel %vm129_vm4, %v125_v7, 0.0 }
 0x14f   :  { %v126_v8 = vmul.f32 %v124_v5, %v113_v6 }
 0x151   :  { %v131_v10 = vsel %vm129_vm4, %v126_v8, 0.0 }
 0x152   :  { %v132_v11 = vadd.f32 %v131_v10, %v130_v9 }
 0x154   :  { %133 = vadd.xlane.f32.xlu0 %v132_v11 }
 0x1e1   :  { %v134_v12 = vpop.xlane.xlu0 %133 }
 0x1e2   :  { %v135_v13 = vrot.slane %v134_v12, 4 }
 0x1e4   :  { %v136_v14 = vadd.f32 %v135_v13, %v134_v12 }
 0x1e6   :  { %v137_v15 = vrot.slane %v136_v14, 2 }
 0x1e8   :  { %v138_v16 = vadd.f32 %v137_v15, %v136_v14 }
 0x1ea   :  { %v139_v17 = vrot.slane %v138_v16, 1 }
 0x1ec   :  { %v140_v18 = vadd.f32 %v139_v17, %v138_v16 }
 0x1ee   :  { %160 = vpush %v140_v18 }
 0x21f   :  { %s161_s2 = spop %160 }
 0x220   :  { %v142_v19 = vstv %s161_s2 }
 0x221   :  { %145 = vst.msk [vmem:[#allocation2] sm:$0x1] %vm144_vm5, %v142_v19 }
 0x222   :  { %185 = shalt.err (!%p182_p4)
}
 0x223   :  { %s186_s6 = scalar_lea.hbm %s274_s4, 16 }
 0x224   :  { %p187_p5 = scmp.ne.s32.totalorder %s274_s4, %s186_s6  ;;  %p190_p6 = scmp.lt.u32.totalorder %s186_s6, %s274_s4 }
 0x226   :  { %p192_p7 = pnand %p190_p6, %p187_p5 }
 0x228   :  { %195 = shalt.err (!%p192_p7)
}
 0x229   :  { %155 = dma.vmem_to_hbm [thread:$0]  %s153_s27, 16, %s274_s4, [#allocation3]  }
 0x22a   :  { %196 = dma.done.wait [#allocation3], 16  }
 0x22b   :  { %197 = vsyncadd [#allocation3], 4294967280 }
 0x22c   :  { %159 = vsyncpa [#allocation3], 1 }

</bundles_post_ra>
